<compile_context>
chip_gen: v7x
topology: tpu7x:2x2x1
jax: 0.10.0
libtpu: 0.0.40
codegen_flags: <defaults>
</compile_context>

<pallas_src>
import functools

import jax
import jax.numpy as jnp
from jax import lax
from jax.experimental import pallas as pl
from jax.experimental.pallas import tpu as pltpu


def _consistency_mse_kernel(x_ref, t_ref, out_ref, *, total_rows, block_rows,
                            need_mask):
    # One (block_rows, C) tile of each input; all math in f32 (v5e VPU/EUP
    # have no bf16 path, and f32 accumulation keeps the squared differences
    # of near-equal sigmoids accurate).
    x = x_ref[...].astype(jnp.float32)
    t = t_ref[...].astype(jnp.float32)

    # sigmoid(a) - sigmoid(b) == 0.5 * (tanh(a/2) - tanh(b/2)); the 0.25
    # factor on the squared difference is applied in the wrapper.  One EUP
    # transcendental per element instead of exp + reciprocal.
    d = jnp.tanh(x * 0.5) - jnp.tanh(t * 0.5)
    d2 = d * d

    if need_mask:
        # Ragged tail: rows at global index >= total_rows hold unspecified
        # data (no pad was done in HBM); select them to exactly 0.
        i = pl.program_id(0)
        row = lax.broadcasted_iota(jnp.int32, d2.shape, 0)
        d2 = jnp.where(row < (total_rows - i * block_rows), d2, 0.0)

    # (block_rows, C) -> (groups, 8, C); sum over the leading axis gives a
    # sublane/lane-aligned (8, C) partial block (pure vreg adds, unmasked
    # aligned stores).  The cross-sublane / cross-lane fold happens once in
    # the wrapper.
    groups = block_rows // 8
    c = d2.shape[-1]
    out_ref[...] = jnp.sum(d2.reshape(groups, 8, c), axis=0)


def consistency_mse(input_logits, target_logits, *, block_rows=None,
                    target_bytes=4 * 1024 * 1024):
    assert input_logits.shape == target_logits.shape
    assert input_logits.ndim == 2
    B, C = input_logits.shape
    num_classes = C
    itemsize = jnp.dtype(input_logits.dtype).itemsize

    # Row tile: ~target_bytes per input block (from the actual input itemsize,
    # so bf16 inputs get larger tiles), multiple of 8.
    if block_rows is None:
        block_rows = max(8, (target_bytes // (C * itemsize)) // 8 * 8)
    # Keep the grid at >= 2 steps when the batch allows (v7x has 2 TCs and the
    # "parallel" grid axis is what gets sharded across them).
    half_rows = max(8, (((B + 1) // 2) + 7) // 8 * 8)
    block_rows = int(min(block_rows, half_rows))
    block_rows = max(8, (block_rows // 8) * 8)

    num_blocks = int(pl.cdiv(B, block_rows))
    need_mask = (B % block_rows) != 0

    kernel = functools.partial(
        _consistency_mse_kernel,
        total_rows=B, block_rows=block_rows, need_mask=need_mask)

    cost = pl.CostEstimate(
        flops=3 * B * C,                      # sub, square, accumulate
        transcendentals=2 * B * C,            # two tanh per element
        bytes_accessed=2 * B * C * itemsize + num_blocks * 8 * C * 4)

    partials = pl.pallas_call(
        kernel,
        out_shape=jax.ShapeDtypeStruct((num_blocks * 8, C), jnp.float32),
        grid_spec=pltpu.PrefetchScalarGridSpec(
            num_scalar_prefetch=0,
            grid=(num_blocks,),
            in_specs=[
                pl.BlockSpec((block_rows, C), lambda i: (i, 0)),
                pl.BlockSpec((block_rows, C), lambda i: (i, 0)),
            ],
            out_specs=pl.BlockSpec((8, C), lambda i: (i, 0)),
        ),
        compiler_params=pltpu.CompilerParams(
            dimension_semantics=("parallel",),
            vmem_limit_bytes=48 * 1024 * 1024),
        cost_estimate=cost,
    )(input_logits, target_logits)

    # 0.25: (sigmoid(a)-sigmoid(b))^2 == 0.25 * (tanh(a/2)-tanh(b/2))^2.
    # Tiny final reduction + normalization happens in XLA (free).
    return jnp.sum(partials) * 0.25 / num_classes


def _reference(x, t):
    # Pure-JAX mirror of the PyTorch forward:
    # F.mse_loss(sigmoid(x), sigmoid(t), size_average=False) / num_classes
    num_classes = x.shape[1]
    d = (jax.nn.sigmoid(x.astype(jnp.float32))
         - jax.nn.sigmoid(t.astype(jnp.float32)))
    return jnp.sum(d * d) / num_classes


if __name__ == "__main__":
    key = jax.random.PRNGKey(0)
    kx, kt, ku, kv = jax.random.split(key, 4)

    # Case 1: [batch=18, num_classes=256] f32.  Batch deliberately not a
    # multiple of the tile -> exercises the in-kernel ragged-tail mask and a
    # 2-step "parallel" grid (block_rows is capped to 16 here).
    B1, C1 = 18, 256
    x1 = jax.random.normal(kx, (B1, C1), dtype=jnp.float32) * 2.0
    t1 = jax.random.normal(kt, (B1, C1), dtype=jnp.float32) * 2.0
    out1 = jax.block_until_ready(consistency_mse(x1, t1))
    ref1 = _reference(x1, t1)
    assert jnp.allclose(out1, ref1, rtol=1e-3, atol=1e-4), (out1, ref1)

    # Case 2: num_classes not a multiple of 128 (typical small class count)
    # plus a ragged batch -> exercises full-C lane-masked blocks + tail mask.
    B2, C2 = 37, 100
    x2 = jax.random.normal(ku, (B2, C2), dtype=jnp.float32) * 2.0
    t2 = jax.random.normal(kv, (B2, C2), dtype=jnp.float32) * 2.0
    out2 = jax.block_until_ready(consistency_mse(x2, t2))
    ref2 = _reference(x2, t2)
    assert jnp.allclose(out2, ref2, rtol=1e-3, atol=1e-4), (out2, ref2)

    print("KERNEL_OK")
</pallas_src>

<mosaic_0001>
module attributes {stable_mosaic.version = 11 : i64} {
  func.func @_consistency_mse_kernel(%arg0: i32, %arg1: memref<16x256xf32, #tpu.memory_space<vmem>>, %arg2: memref<16x256xf32, #tpu.memory_space<vmem>>, %arg3: memref<8x256xf32, #tpu.memory_space<vmem>>) attributes {dimension_semantics = [#tpu.dimension_semantics<parallel>], iteration_bounds = array<i64: 2>, scalar_prefetch = 0 : i64, scratch_operands = 0 : i64, tpu.core_type = #tpu.core_type<tc>, window_params = [{transform_indices = @transform_0, window_bounds = array<i64: 16, 256>}, {transform_indices = @transform_1, window_bounds = array<i64: 16, 256>}, {transform_indices = @transform_2, window_bounds = array<i64: 8, 256>}]} {
    %c0 = arith.constant 0 : index
    %c0_0 = arith.constant 0 : index
    %0 = vector.load %arg1[%c0, %c0_0] : memref<16x256xf32, #tpu.memory_space<vmem>>, vector<16x256xf32>
    %c0_1 = arith.constant 0 : index
    %c0_2 = arith.constant 0 : index
    %1 = vector.load %arg2[%c0_1, %c0_2] : memref<16x256xf32, #tpu.memory_space<vmem>>, vector<16x256xf32>
    %cst = arith.constant 5.000000e-01 : f32
    %2 = vector.broadcast %cst : f32 to vector<16x256xf32>
    %3 = arith.mulf %0, %2 : vector<16x256xf32>
    %4 = math.tanh %3 : vector<16x256xf32>
    %cst_3 = arith.constant 5.000000e-01 : f32
    %5 = vector.broadcast %cst_3 : f32 to vector<16x256xf32>
    %6 = arith.mulf %1, %5 : vector<16x256xf32>
    %7 = math.tanh %6 : vector<16x256xf32>
    %8 = arith.subf %4, %7 : vector<16x256xf32>
    %9 = arith.mulf %8, %8 : vector<16x256xf32>
    %10 = tpu.iota {dimensions = array<i32: 0>} : vector<16x256xi32>
    %c16_i32 = arith.constant 16 : i32
    %11 = arith.muli %arg0, %c16_i32 : i32
    %c18_i32 = arith.constant 18 : i32
    %12 = arith.subi %c18_i32, %11 : i32
    %13 = vector.broadcast %12 : i32 to vector<16x256xi32>
    %14 = arith.cmpi slt, %10, %13 : vector<16x256xi32>
    %cst_4 = arith.constant 0.000000e+00 : f32
    %15 = vector.broadcast %cst_4 : f32 to vector<16x256xf32>
    %16 = arith.select %14, %9, %15 : vector<16x256xi1>, vector<16x256xf32>
    %17 = vector.shape_cast %16 : vector<16x256xf32> to vector<2x8x256xf32>
    %cst_5 = arith.constant dense<0.000000e+00> : vector<8x256xf32>
    %18 = vector.multi_reduction <add>, %17, %cst_5 [0] : vector<2x8x256xf32> to vector<8x256xf32>
    %c0_6 = arith.constant 0 : index
    %c0_7 = arith.constant 0 : index
    %19 = vector.load %arg3[%c0_6, %c0_7] : memref<8x256xf32, #tpu.memory_space<vmem>>, vector<8x256xf32>
    tpu.vector_store %arg3[%c0_6, %c0_7], %18 {strides = array<i32>} : memref<8x256xf32, #tpu.memory_space<vmem>>, vector<8x256xf32>,
    return
  }
  func.func @transform_0(%arg0: i32) -> (i32, i32) {
    %c0_i32 = arith.constant 0 : i32
    %c0_i32_0 = arith.constant 0 : i32
    return %arg0, %c0_i32 : i32, i32
  }
  func.func @transform_1(%arg0: i32) -> (i32, i32) {
    %c0_i32 = arith.constant 0 : i32
    %c0_i32_0 = arith.constant 0 : i32
    return %arg0, %c0_i32 : i32, i32
  }
  func.func @transform_2(%arg0: i32) -> (i32, i32) {
    %c0_i32 = arith.constant 0 : i32
    %c0_i32_0 = arith.constant 0 : i32
    return %arg0, %c0_i32 : i32, i32
  }
}

</mosaic_0001>

<bundles_post_ra>
// kernel: tpu_custom_call.1
= control target key start
LH: loop header
LB: loop body
LE: loop exit
PB: predicated region body
PF: predicated region fallthrough
CT: control target
= control target key end

     0   :  { %7 = vsyncpa [#allocation3], 0  ;;  %s864_s0 = inlined_call_operand.hbm [shape: f32[18,256], index: 0, kind: input, shape index: {}]   ;;  %s865_s1 = inlined_call_operand.hbm [shape: f32[18,256], index: 1, kind: input, shape index: {}]   ;;  %s866_s2 = inlined_call_operand.hbm [shape: f32[16,256], index: 2, kind: output, shape index: {}]  }
   0x1   :  { %9 = vsyncpa [#allocation3 + $0x1], 0 }
   0x2   :  { %10 = vsyncpa [#allocation6], 0 }
   0x3   :  { %12 = vsyncpa [#allocation6 + $0x1], 0 }
   0x4   :  { %13 = vsyncpa [#allocation4], 0 }
   0x5   :  { %15 = vsyncpa [#allocation4 + $0x1], 0  ;;  %s635_s9 = smov 0   ;;  %s637_s10 = smov 0  }
   0x6   :  { %s639_s11 = smov 0   ;;  %s641_s12 = smov 0  }
   0x7 LB: > { %s656_s13 = sadd.s32 4294967295, %s611_s12   ;;  %s386_s14 = sadd.s32 4294967294, %s611_s12   ;;  %s611_s12 = sphi %s641_s12, %s883_s12   ;;  %s607_s11 = sphi %s639_s11, %s882_s11   ;;  %s603_s10 = sphi %s637_s10, %s881_s10   ;;  %s599_s9 = sphi %s635_s9, %s880_s9  }
   0x8   : > { %s660_s15 = sadd.s32 1, %s611_s12   ;;  %s28_s16 = sadd.s32 1, %s607_s11 }
   0x9   : > { %s25_s17 = ssub.s32 %s611_s12, %s660_s15  ;;  %p35_p0 = scmp.ne.s32.totalorder %s607_s11, %s603_s10 }
   0xa   : > { %p26_p1 = scmp.eq.s32.totalorder %s25_s17, 0  ;;  %p36_p2 = scmp.eq.s32.totalorder %s611_s12, 0 }
   0xb   : > { %p41_p3 = scmp.ne.s32.totalorder %s603_s10, %s599_s9  ;;  %p42_p4 = scmp.eq.s32.totalorder %s656_s13, 0 }
   0xc   : > { %s672_s18 = scalar_select %p26_p1, %s607_s11, %s28_s16  }
   0xd   : > { %p674_p5 = por %p36_p2, %p35_p0  ;;  %p678_p6 = por %p42_p4, %p41_p3 }
   0xe   : > { %p91_p7 = scmp.eq.s32.totalorder %s656_s13, 1  ;;  %p97_p8 = scmp.eq.s32.totalorder %s386_s14, 1 }
   0xf   : > { %p867_p11 = scmp.ge.s32.totalorder %s611_s12, 2 }
  0x10   : > { %p683_p9 = por %p91_p7, %p35_p0  ;;  %p687_p10 = por %p97_p8, %p41_p3 }
  0x11   : > { %113 = sbr.rel (%p867_p11) target bundleno = 94 (0x5e), region = 16 }
  0x12   : > { %s871_s21 = scalar_select %p683_p9, 1, 0 }
  0x13   : > { %s872_s22 = scalar_select %p687_p10, 1, 0 }
  0x18   : > { %116 = sbr.rel (!%p674_p5) target bundleno = 59 (0x3b), region = 20  ;;  %s117_s23 = sand.u32 (%p674_p5), 1, %s607_s11  }
  0x19   : > { %s390_s24 = sshll.u32 (%p674_p5), %s611_s12, 1  ;;  %s389_s25 = sshll.u32 (%p674_p5), %s117_s23, 5 }
  0x1a   : > { %s123_s26 = ssub.s32 (%p674_p5), 3, %s390_s24  ;;  %s701_s29 = scalar_lea.sflag (%p674_p5), [#allocation3], %s117_s23 }
  0x1b   : > { %p124_p12 = scmp.lt.s32.totalorder (%p674_p5), %s123_s26, 2  ;;  %s121_s30 = scalar_lea.vmem (%p674_p5), [#allocation2], %s389_s25 }
  0x1f   : > { %s885_s26 = smov (!%p124_p12, %s123_s26), 2 }
  0x20   : > { %s698_s27 = sshll.u32 %s885_s26, 8 }
  0x21   : > { %s129_s28 = ssub.s32 512, %s698_s27 }
  0x22   : > { %130 = vsyncadd %s701_s29, %s129_s28  ;;  %p393_p13 = scmp.ne.s32.totalorder %s698_s27, 0  ;;  %s419_s3 = sshll.u32 %s611_s12, 9 }
  0x23   : > { %s709_s6 = scalar_lea.hbm %s864_s0, %s419_s3  ;;  %s136_s7 = sshll.u32 %s121_s30, 4  ;;  %s711_s7 = int_to_ptr.vmem [resolvable:$true] %s136_s7 }
  0x24   : > { %s485_s8 = scalar_lea.hbm %s709_s6, %s698_s27  ;;  %s489_s17 = scalar_lea.hbm %s864_s0, 768 }
  0x25   : > { %p486_p0 = scmp.ne.s32.totalorder %s709_s6, %s485_s8  ;;  %p490_p3 = scmp.lt.u32.totalorder %s709_s6, %s864_s0 }
  0x26   : > { %p491_p4 = scmp.lt.u32.totalorder %s489_s17, %s485_s8  ;;  %p493_p8 = scmp.lt.u32.totalorder %s485_s8, %s709_s6 }
  0x27   : > { %p487_p1 = pnand %p486_p0, %p393_p13 }
  0x28   : > { %p492_p7 = por %p491_p4, %p490_p3 }
  0x29   : > { %p488_p2 = pneg %p487_p1 }
  0x2a   : > { %p494_p12 = por %p493_p8, %p492_p7 }
  0x2c   : > { %p495_p11 = pnand %p494_p12, %p488_p2 }
  0x2e   : > { %498 = shalt.err (!%p495_p11)
}
  0x2f   : > { %s499_s25 = scalar_lea.vmem %s711_s7, %s698_s27  ;;  %s613_s26 = smov [#allocation2]  }
  0x30   : > { %p500_p0 = scmp.ne.s32.totalorder %s711_s7, %s499_s25  ;;  %s503_s28 = sshll.u32 %s613_s26, 4  ;;  %s504_s28 = int_to_ptr.vmem [resolvable:$false] %s503_s28 }
  0x31   : > { %s505_s30 = scalar_lea.vmem %s504_s28, 1024  ;;  %p506_p9 = scmp.lt.s32.totalorder %s711_s7, %s504_s28 }
  0x32   : > { %p501_p1 = pnand %p500_p0, %p393_p13  ;;  %p507_p3 = scmp.lt.s32.totalorder %s505_s30, %s499_s25 }
  0x34   : > { %p502_p10 = pneg %p501_p1  ;;  %p508_p4 = por %p507_p3, %p506_p9 }
  0x36   : > { %p509_p7 = pnand %p508_p4, %p502_p10 }
  0x38   : > { %512 = shalt.err (!%p509_p7)
}
  0x39   : > { %s614_s3 = smov 256   ;;  %s615_s4 = smov 16  }
  0x3a   : > { %142 = dma.hbm_to_vmem [thread:$0]  (%p393_p13), %s709_s6, %s698_s27, %s711_s7, %s701_s29, %s614_s3, %s614_s3, %s615_s4  }
  0x3b PF: > { %145 = sbr.rel (!%p674_p5) target bundleno = 94 (0x5e), region = 24  ;;  %s146_s5 = sand.u32 (%p674_p5), 1, %s607_s11  }
  0x3c   : > { %s399_s8 = sshll.u32 (%p674_p5), %s611_s12, 1  ;;  %s398_s14 = sshll.u32 (%p674_p5), %s146_s5, 5 }
  0x3d   : > { %s152_s16 = ssub.s32 (%p674_p5), 3, %s399_s8  ;;  %s745_s24 = scalar_lea.sflag (%p674_p5), [#allocation6], %s146_s5 }
  0x3e   : > { %p153_p9 = scmp.lt.s32.totalorder (%p674_p5), %s152_s16, 2  ;;  %s150_s27 = scalar_lea.vmem (%p674_p5), [#allocation5], %s398_s14 }
  0x42   : > { %s887_s16 = smov (!%p153_p9, %s152_s16), 2 }
  0x43   : > { %s742_s17 = sshll.u32 %s887_s16, 8 }
  0x44   : > { %s158_s23 = ssub.s32 512, %s742_s17 }
  0x45   : > { %159 = vsyncadd %s745_s24, %s158_s23  ;;  %p402_p5 = scmp.ne.s32.totalorder %s742_s17, 0  ;;  %s422_s19 = sshll.u32 %s611_s12, 9 }
  0x46   : > { %s753_s7 = scalar_lea.hbm %s865_s1, %s422_s19  ;;  %s165_s25 = sshll.u32 %s150_s27, 4  ;;  %s755_s25 = int_to_ptr.vmem [resolvable:$true] %s165_s25 }
  0x47   : > { %s513_s26 = scalar_lea.hbm %s753_s7, %s742_s17  ;;  %s517_s3 = scalar_lea.hbm %s865_s1, 768 }
  0x48   : > { %p514_p10 = scmp.ne.s32.totalorder %s753_s7, %s513_s26  ;;  %p518_p2 = scmp.lt.u32.totalorder %s753_s7, %s865_s1 }
  0x49   : > { %p519_p8 = scmp.lt.u32.totalorder %s517_s3, %s513_s26  ;;  %p521_p0 = scmp.lt.u32.totalorder %s513_s26, %s753_s7 }
  0x4a   : > { %p515_p11 = pnand %p514_p10, %p402_p5 }
  0x4b   : > { %p520_p12 = por %p519_p8, %p518_p2 }
  0x4c   : > { %p516_p13 = pneg %p515_p11 }
  0x4d   : > { %p522_p1 = por %p521_p0, %p520_p12 }
  0x4f   : > { %p523_p3 = pnand %p522_p1, %p516_p13 }
  0x51   : > { %526 = shalt.err (!%p523_p3)
}
  0x52   : > { %s527_s8 = scalar_lea.vmem %s755_s25, %s742_s17  ;;  %s616_s14 = smov [#allocation5]  }
  0x53   : > { %p528_p4 = scmp.ne.s32.totalorder %s755_s25, %s527_s8  ;;  %s531_s16 = sshll.u32 %s616_s14, 4  ;;  %s532_s16 = int_to_ptr.vmem [resolvable:$false] %s531_s16 }
  0x54   : > { %s533_s23 = scalar_lea.vmem %s532_s16, 1024  ;;  %p534_p10 = scmp.lt.s32.totalorder %s755_s25, %s532_s16 }
  0x55   : > { %p529_p7 = pnand %p528_p4, %p402_p5  ;;  %p535_p11 = scmp.lt.s32.totalorder %s533_s23, %s527_s8 }
  0x57   : > { %p530_p9 = pneg %p529_p7  ;;  %p536_p2 = por %p535_p11, %p534_p10 }
  0x59   : > { %p537_p8 = pnand %p536_p2, %p530_p9 }
  0x5b   : > { %540 = shalt.err (!%p537_p8)
}
  0x5c   : > { %s617_s27 = smov 256   ;;  %s618_s19 = smov 16  }
  0x5d   : > { %171 = dma.hbm_to_vmem [thread:$0]  (%p402_p5), %s753_s7, %s742_s17, %s755_s25, %s745_s24, %s617_s27, %s617_s27, %s618_s19  }
  0x5e PF: > { %p407_p13 = scmp.ge.s32.totalorder %s611_s12, 1  ;;  %p173_p12 = scmp.lt.s32.totalorder %s611_s12, 3 }
  0x60   : > { %p174_p0 = pnand %p407_p13, %p173_p12 }
  0x61   : > { %s785_s29 = sand.u32 (!%p174_p0), 1, %s603_s10  }
  0x62   : > { %177 = sbr.rel (%p174_p0) target bundleno = 150 (0x96), region = 28  ;;  %s408_s6 = sshll.u32 (!%p174_p0), %s785_s29, 5 }
  0x63   : > { %s180_s26 = scalar_lea.sflag (!%p174_p0), [#allocation3], %s785_s29  ;;  %s183_s28 = scalar_lea.vmem (!%p174_p0), [#allocation2], %s408_s6 }
  0x69   : > { %586 = dma.done.wait (%p678_p6), %s180_s26, 512  }
  0x6a   : > { %588 = vsyncadd (%p678_p6), %s180_s26, 4294966784  ;;  %s189_s17 = scalar_lea.sflag [#allocation6], %s785_s29  ;;  %s192_s24 = scalar_lea.vmem [#allocation5], %s408_s6 }
  0x6b   : > { %590 = dma.done.wait (%p678_p6), %s189_s17, 512  }
  0x6c   : > { %592 = vsyncadd (%p678_p6), %s189_s17, 4294966784  ;;  %v230_v0 = vld [vmem:[%s183_s28] sm:$0xff]  ;;  %v232_v1 = vld [vmem:[%s183_s28 + $0x10] sm:$0xff]  ;;  %v262_v15 = vlaneseq  ;;  %s411_s20 = sshll.u32 %s656_s13, 4  ;;  %s410_s25 = sshll.u32 %s785_s29, 4 }
  0x6d   : > { %v234_v2 = vld [vmem:[%s192_s24] sm:$0xff]  ;;  %v236_v3 = vld [vmem:[%s192_s24 + $0x10] sm:$0xff]  ;;  %v238_v4 = vmul.f32 0.5, %v230_v0  ;;  %v240_v5 = vmul.f32 0.5, %v232_v1  ;;  %v231_v7 = vld [vmem:[%s183_s28 + $0x8] sm:$0xff]  ;;  %s266_s7 = ssub.s32 18, %s411_s20 }
  0x6e   : > { %v246_v6 = vmul.f32 0.5, %v234_v2  ;;  %v233_v8 = vld [vmem:[%s183_s28 + $0x18] sm:$0xff]  ;;  %v248_v9 = vmul.f32 0.5, %v236_v3  ;;  %v235_v10 = vld [vmem:[%s192_s24 + $0x8] sm:$0xff]  ;;  %v239_v12 = vmul.f32 0.5, %v231_v7  ;;  %v263_v17 = vshrl.u32 %v262_v15, 7 }
  0x6f   : > { %469 = vtanh.f32 %v238_v4  ;;  %v237_v11 = vld [vmem:[%s192_s24 + $0x18] sm:$0xff]  ;;  %v241_v13 = vmul.f32 0.5, %v233_v8  ;;  %v247_v14 = vmul.f32 0.5, %v235_v10  ;;  %v267_v21 = vstv %s266_s7  ;;  %s217_s30 = scalar_lea.vmem [#allocation7], %s410_s25  ;;  %s423_s4 = sshll.u32 %s656_s13, 8 }
  0x70   : > { %471 = vtanh.f32 %v240_v5  ;;  %v249_v16 = vmul.f32 0.5, %v237_v11  ;;  %v264_v20 = vadd.s32 8, %v263_v17  ;;  %vm800_vm0 = vcmp.lt.s32.totalorder %v263_v17, %v267_v21  ;;  %s293_s3 = sshll.u32 %s217_s30, 4  ;;  %s822_s14 = scalar_lea.hbm %s866_s2, %s423_s4  ;;  %s817_s3 = int_to_ptr.vmem [resolvable:$true] %s293_s3 }
  0x71   : > { %473 = vtanh.f32 %v246_v6  ;;  %s279_s13 = scalar_lea.sflag [#allocation4], %s785_s29  ;;  %s541_s16 = scalar_lea.vmem %s817_s3, 256 }
  0x72   : > { %475 = vtanh.f32 %v248_v9  ;;  %vm804_vm1 = vcmp.lt.s32.totalorder %v264_v20, %v267_v21  ;;  %p542_p6 = scmp.ne.s32.totalorder %s817_s3, %s541_s16  ;;  %p877_p5 = scmp.ne.s32.totalorder %s871_s21, 0 }
  0x73   : > { %477 = vtanh.f32 %v239_v12  ;;  %s619_s23 = smov [#allocation7]  }
  0x74   : > { %479 = vtanh.f32 %v241_v13  ;;  %p543_p1 = pnand %p542_p6, %p877_p5  ;;  %s545_s27 = sshll.u32 %s619_s23, 4  ;;  %s546_s27 = int_to_ptr.vmem [resolvable:$false] %s545_s27 }
  0x75   : > { %481 = vtanh.f32 %v247_v14  ;;  %s547_s19 = scalar_lea.vmem %s546_s27, 512  ;;  %p548_p4 = scmp.lt.s32.totalorder %s817_s3, %s546_s27 }
  0x76   : > { %483 = vtanh.f32 %v249_v16  ;;  %p544_p3 = pneg %p543_p1  ;;  %p549_p7 = scmp.lt.s32.totalorder %s547_s19, %s541_s16 }
  0x78   : > { %p550_p9 = por %p549_p7, %p548_p4 }
  0x79   : > { %v470_v18 = vpop.eup %469 }
  0x7a   : > { %v472_v19 = vpop.eup %471  ;;  %p551_p10 = pnand %p550_p9, %p544_p3 }
  0x7b   : > { %v474_v22 = vpop.eup %473 }
  0x7c   : > { %v476_v23 = vpop.eup %475  ;;  %v254_v24 = vsub.f32 %v470_v18, %v474_v22 }
  0x7d   : > { %v478_v25 = vpop.eup %477  ;;  %v256_v26 = vsub.f32 %v472_v19, %v476_v23 }
  0x7e   : > { %v480_v28 = vpop.eup %479  ;;  %v258_v29 = vmul.f32 %v254_v24, %v254_v24 }
  0x7f   : > { %v482_v31 = vpop.eup %481  ;;  %v260_v32 = vmul.f32 %v256_v26, %v256_v26 }
  0x80   : > { %v484_v33 = vpop.eup %483  ;;  %v270_v34 = vsel %vm800_vm0, %v258_v29, 0.0  ;;  %v255_v35 = vsub.f32 %v478_v25, %v482_v31 }
  0x81   : > { %v272_v36 = vsel %vm804_vm1, %v260_v32, 0.0  ;;  %v257_v37 = vsub.f32 %v480_v28, %v484_v33 }
  0x82   : > { %v274_v38 = vadd.f32 %v272_v36, %v270_v34  ;;  %v259_v39 = vmul.f32 %v255_v35, %v255_v35 }
  0x83   : > { %v261_v40 = vmul.f32 %v257_v37, %v257_v37 }
  0x84   : > { %276 = vst [vmem:[%s217_s30] sm:$0xff] %v274_v38  ;;  %v271_v41 = vsel %vm800_vm0, %v259_v39, 0.0 }
  0x85   : > { %v273_v42 = vsel %vm804_vm1, %v261_v40, 0.0 }
  0x86   : > { %v275_v43 = vadd.f32 %v273_v42, %v271_v41 }
  0x88   : > { %277 = vst [vmem:[%s217_s30 + $0x8] sm:$0xff] %v275_v43 }
  0x89   : > { %554 = shalt.err (!%p551_p10)
}
  0x8a   : > { %s555_s29 = scalar_lea.hbm %s822_s14, 256  ;;  %s559_s28 = scalar_lea.hbm %s866_s2, 512 }
  0x8b   : > { %p556_p11 = scmp.ne.s32.totalorder %s822_s14, %s555_s29  ;;  %p560_p13 = scmp.lt.u32.totalorder %s822_s14, %s866_s2 }
  0x8c   : > { %p561_p12 = scmp.lt.u32.totalorder %s559_s28, %s555_s29  ;;  %p563_p6 = scmp.lt.u32.totalorder %s555_s29, %s822_s14 }
  0x8d   : > { %p557_p2 = pnand %p556_p11, %p877_p5 }
  0x8e   : > { %p562_p0 = por %p561_p12, %p560_p13 }
  0x8f   : > { %p558_p8 = pneg %p557_p2 }
  0x90   : > { %p564_p1 = por %p563_p6, %p562_p0 }
  0x92   : > { %p565_p3 = pnand %p564_p1, %p558_p8 }
  0x94   : > { %568 = shalt.err (!%p565_p3)
}
  0x95   : > { %426 = dma.vmem_to_hbm [thread:$0]  (%p877_p5), %s817_s3, 256, %s822_s14, %s279_s13  }
  0x96 PF: > { %s305_s20 = sand.u32 1, %s599_s9   ;;  %p878_p4 = scmp.ne.s32.totalorder %s872_s22, 0 }
  0x97   : > { %p879_p7 = scmp.ge.s32.totalorder %s611_s12, 2  ;;  %s306_s7 = scalar_lea.sflag [#allocation4], %s305_s20 }
  0x99   : > { %p429_p9 = pnand %p879_p7, %p878_p4 }
  0x9b   : > { %594 = dma.done.wait (!%p429_p9), %s306_s7, 256  }
  0x9c   : > { %596 = vsyncadd (!%p429_p9), %s306_s7, 4294967040  ;;  %p18_p10 = scmp.ge.s32.totalorder %s660_s15, 4   ;;  %s880_s9 = smov %s603_s10 }
  0x9d   : > { %s881_s10 = smov %s607_s11  ;;  %s882_s11 = smov %s672_s18 }
  0x9e   : > { %s883_s12 = smov %s660_s15  ;;  %20 = sbr.rel (!%p18_p10) target bundleno = 7 (0x7), region = 86 }
  0xa5   :  { %311 = vsyncpa [#allocation3], 1 }
  0xa6   :  { %313 = vsyncpa [#allocation3 + $0x1], 1 }
  0xa7   :  { %314 = vsyncpa [#allocation6], 1 }
  0xa8   :  { %316 = vsyncpa [#allocation6 + $0x1], 1 }
  0xa9   :  { %317 = vsyncpa [#allocation4], 1 }
  0xaa   :  { %319 = vsyncpa [#allocation4 + $0x1], 1 }

</bundles_post_ra>
